<compile_context>
chip_gen: v7x
topology: tpu7x:2x2x1
jax: 0.10.0
libtpu: 0.0.40
codegen_flags: <defaults>
</compile_context>

<pallas_src>
import functools
import math

import jax
import jax.numpy as jnp
from jax.experimental import pallas as pl
from jax.experimental.pallas import tpu as pltpu

ALPHA = 1.0        # CFG.fl_alpha / FocalLoss default
GAMMA = 2.0        # CFG.fl_gamma / FocalLoss default
EPSILON = 1e-12    # used by the PyTorch reference formulation
_LOG_EPS = math.log(EPSILON)
_F32_TEMPS = 8     # budget for live f32 (block_b, C) intermediates in the kernel


def _generation_defaults():
    """Per-TPU-generation defaults for tile size, scoped VMEM limit and cores."""
    kind = ""
    try:
        kind = jax.devices()[0].device_kind.lower()
    except Exception:
        pass
    vmem_cap = None
    try:
        vmem_cap = pltpu.get_tpu_info().vmem_capacity_bytes
    except Exception:
        pass
    is_v7 = "v7" in kind
    small_vmem = is_v7 or (vmem_cap is not None and vmem_cap <= 64 * 1024 * 1024)
    if vmem_cap is None and not kind:
        small_vmem = True  # unknown hardware -> be conservative
    if small_vmem:
        # v7x: 64 MiB physical VMEM, 2 TensorCores.
        return {"tile_bytes": 2 << 20, "vmem_limit_bytes": 32 << 20,
                "num_cores": 2 if is_v7 else 1}
    # v5e / v6e: 128 MiB VMEM, single TensorCore -> larger tiles amortize step overhead.
    return {"tile_bytes": 8 << 20, "vmem_limit_bytes": 64 << 20, "num_cores": 1}


def _focal_loss_kernel(logits_ref, target_ref, w_ref, out_ref, acc_ref, *,
                       alpha, gamma, binary_targets, total_rows, block_b, steps,
                       apply_row_mask):
    """Grid = (parallel, steps). Axis 0: independent partial sums (megacore);
    axis 1: reduction over batch tiles within a partition."""
    j = pl.program_id(1)

    # Zero the per-class accumulator at the start of each partition.
    @pl.when(j == 0)
    def _():
        acc_ref[...] = jnp.zeros_like(acc_ref)

    x = logits_ref[...].astype(jnp.float32)          # (block_b, C)
    t = target_ref[...].astype(jnp.float32)          # (block_b, C)

    if binary_targets:
        # t in {0,1}: log_pt = log(sigmoid(z)), pt = sigmoid(z), z = (2t-1)*x.
        # 2 EUP transcendentals (exp, log) + 1 near-free approx reciprocal.
        z = (2.0 * t - 1.0) * x
        e = jnp.exp(-jnp.abs(z))                                   # EUP #1
        log_pt = jnp.minimum(z, 0.0) - jnp.log(1.0 + e)            # EUP #2
        pt = jnp.where(z >= 0.0, 1.0, e) * pl.reciprocal(1.0 + e, approx=True)
    else:
        # Soft-target fallback: generic formulation (3 transcendentals/elem).
        log_p = jnp.minimum(x, 0.0) - jnp.log(1.0 + jnp.exp(-jnp.abs(x)))
        log_1mp = log_p - x                                        # log(1 - sigmoid(x))
        log_pt = (t * jnp.maximum(log_p, _LOG_EPS)
                  + (1.0 - t) * jnp.maximum(log_1mp, _LOG_EPS))
        pt = jnp.exp(log_pt)

    # Faithful to the reference's log(p + eps) clamp for saturated logits.
    log_pt = jnp.maximum(log_pt, _LOG_EPS)

    one_minus_pt = 1.0 - pt
    if gamma == 2.0:
        modulator = one_minus_pt * one_minus_pt        # VPU square, no pow
    elif gamma == 1.0:
        modulator = one_minus_pt
    else:
        modulator = jnp.maximum(one_minus_pt, 0.0) ** gamma
    focal = (-alpha) * modulator * log_pt              # (block_b, C)

    def _accumulate(vals):
        # Sum sublane-groups of 8 rows with pure vreg-wise VPU adds; the single
        # cross-sublane reduce is deferred to the finalize block.
        acc_ref[...] += jnp.sum(vals.reshape(-1, 8, vals.shape[-1]), axis=0)

    if apply_row_mask:
        # Unclamped global row offset of this logical tile (duplicate tiles map
        # past total_rows and are fully masked out).
        row0 = (pl.program_id(0) * steps + j) * block_b

        @pl.when(row0 + block_b <= total_rows)
        def _():
            _accumulate(focal)

        @pl.when(row0 + block_b > total_rows)
        def _():
            rows = jax.lax.broadcasted_iota(jnp.int32, focal.shape, 0) + row0
            _accumulate(jnp.where(rows < total_rows, focal, 0.0))
    else:
        _accumulate(focal)

    # Finalize this partition: weights, scalar reduce, single store.
    @pl.when(j == pl.num_programs(1) - 1)
    def _():
        w = w_ref[...].astype(jnp.float32)             # (1, C)
        out_ref[...] = jnp.sum(acc_ref[...] * w).reshape(1, 1, 1)


def focal_loss_pallas(logits, target, cls_weights, *, alpha=ALPHA, gamma=GAMMA,
                      binary_targets=True, block_b=None, num_cores=None,
                      tile_bytes=None, vmem_limit_bytes=None):
    """logits, target: [B, C] (f32 or bf16; bf16 is preferred to halve HBM traffic);
    cls_weights: [1, C]. Returns scalar f32 mean focal loss."""
    B, C = logits.shape
    assert target.shape == (B, C)
    assert cls_weights.shape == (1, C)
    # Note: C should be a multiple of 128 for full lane utilization (block spans
    # the full class axis, so other values are still legal).

    gen = _generation_defaults()
    if tile_bytes is None:
        tile_bytes = gen["tile_bytes"]
    if vmem_limit_bytes is None:
        vmem_limit_bytes = gen["vmem_limit_bytes"]
    if num_cores is None:
        num_cores = gen["num_cores"]

    itemsize = jnp.dtype(logits.dtype).itemsize
    sub = max(8, 32 // max(itemsize, 1))               # sublane multiple: f32->8, bf16->16

    if block_b is None:
        per_row_in = C * itemsize                      # one row of one input tile
        per_row_pipe = 2 * 2 * per_row_in              # 2 inputs x double buffering
        per_row_tmp = _F32_TEMPS * C * 4               # live f32 intermediates per row
        rows_cap_tile = tile_bytes // max(per_row_in, 1)
        rows_cap_vmem = (vmem_limit_bytes * 3 // 4) // max(per_row_pipe + per_row_tmp, 1)
        rows_cap = max(sub, (min(rows_cap_tile, rows_cap_vmem) // sub) * sub)
        rows_needed = ((B + sub - 1) // sub) * sub
        block_b = min(rows_cap, rows_needed)
    else:
        block_b = max(sub, ((block_b + sub - 1) // sub) * sub)

    num_blocks = pl.cdiv(B, block_b)
    # Always split into num_cores partitions (never serialize a v7x TensorCore);
    # ceil-divided steps, short/duplicate tiles handled by the row mask.
    parallel = max(1, min(num_cores, num_blocks))
    steps = pl.cdiv(num_blocks, parallel)
    apply_row_mask = (B % block_b != 0) or (parallel * steps != num_blocks)

    kernel = functools.partial(
        _focal_loss_kernel,
        alpha=float(alpha),
        gamma=float(gamma),
        binary_targets=binary_targets,
        total_rows=B,
        block_b=block_b,
        steps=steps,
        apply_row_mask=apply_row_mask,
    )

    last_block = num_blocks - 1
    data_map = lambda p, j: (jnp.minimum(p * steps + j, last_block), 0)

    partial_sums = pl.pallas_call(
        kernel,
        out_shape=jax.ShapeDtypeStruct((parallel, 1, 1), jnp.float32),
        grid_spec=pltpu.PrefetchScalarGridSpec(
            num_scalar_prefetch=0,
            grid=(parallel, steps),
            in_specs=[
                pl.BlockSpec((block_b, C), data_map),        # logits tile
                pl.BlockSpec((block_b, C), data_map),        # target tile
                pl.BlockSpec((1, C), lambda p, j: (0, 0)),   # class weights (resident)
            ],
            out_specs=pl.BlockSpec((1, 1, 1), lambda p, j: (p, 0, 0)),
            scratch_shapes=[pltpu.VMEM((8, C), jnp.float32)],  # per-class accumulator
        ),
        compiler_params=pltpu.CompilerParams(
            dimension_semantics=("parallel", "arbitrary"),
            vmem_limit_bytes=vmem_limit_bytes,
        ),
    )(logits, target, cls_weights)

    # Sum the per-partition weighted sums and normalize by the true element count.
    return jnp.sum(partial_sums) / jnp.float32(B * C)


def focal_loss_ref(logits, target, cls_weights, *, alpha=ALPHA, gamma=GAMMA):
    """Pure-JAX reference matching the PyTorch module (eps formulation)."""
    probs = jax.nn.sigmoid(logits.astype(jnp.float32))
    t = target.astype(jnp.float32)
    log_pt = t * jnp.log(probs + EPSILON) + (1.0 - t) * jnp.log(1.0 - probs + EPSILON)
    pt = jnp.exp(log_pt)
    fl = -1.0 * (alpha * (1.0 - pt) ** gamma) * log_pt
    fl = fl * cls_weights.astype(jnp.float32)
    return jnp.mean(fl)


if __name__ == "__main__":
    # TODO(synk): the reference forward's debug print(target.shape, ...) is omitted.
    B, C = 16, 256
    key = jax.random.PRNGKey(0)
    k1, k2, k3, k4, k5, k6, k7 = jax.random.split(key, 7)

    # Deterministic synthetic per-class weights (CFG.class_weights is empty in source).
    cls_weights = jax.random.uniform(k3, (1, C), jnp.float32, minval=0.5, maxval=1.5)

    # Case 1: f32 inputs, binary-target fast path (2 transcendentals + approx rcp).
    logits = jax.random.normal(k1, (B, C), dtype=jnp.float32) * 2.0
    target = (jax.random.uniform(k2, (B, C)) > 0.7).astype(jnp.float32)
    loss = jax.block_until_ready(focal_loss_pallas(logits, target, cls_weights))
    ref = focal_loss_ref(logits, target, cls_weights)
    assert jnp.allclose(loss, ref, rtol=3e-3, atol=1e-5), (loss, ref)

    # Case 2: ragged batch + forced 2-partition grid + soft-target fallback (exact path).
    B2 = 30
    logits2 = jax.random.normal(k4, (B2, C), dtype=jnp.float32) * 2.0
    target2 = (jax.random.uniform(k5, (B2, C)) > 0.7).astype(jnp.float32)
    loss2 = jax.block_until_ready(
        focal_loss_pallas(logits2, target2, cls_weights, binary_targets=False,
                          block_b=8, num_cores=2))
    ref2 = focal_loss_ref(logits2, target2, cls_weights)
    assert jnp.allclose(loss2, ref2, rtol=1e-5, atol=1e-6), (loss2, ref2)

    # Case 3: bf16 inputs in HBM (half the read bytes) + duplicate-tile masking.
    B3 = 48
    logits3 = (jax.random.normal(k6, (B3, C), dtype=jnp.float32) * 2.0).astype(jnp.bfloat16)
    target3 = (jax.random.uniform(k7, (B3, C)) > 0.7).astype(jnp.bfloat16)
    loss3 = jax.block_until_ready(
        focal_loss_pallas(logits3, target3, cls_weights, block_b=16, num_cores=2))
    ref3 = focal_loss_ref(logits3.astype(jnp.float32), target3.astype(jnp.float32),
                          cls_weights)
    assert jnp.allclose(loss3, ref3, rtol=3e-3, atol=1e-5), (loss3, ref3)

    print("KERNEL_OK")
</pallas_src>

<mosaic_0001>
module attributes {stable_mosaic.version = 11 : i64} {
  func.func @_focal_loss_kernel(%arg0: i32, %arg1: i32, %arg2: memref<16x256xf32, #tpu.memory_space<vmem>>, %arg3: memref<16x256xf32, #tpu.memory_space<vmem>>, %arg4: memref<1x256xf32, #tpu.memory_space<vmem>>, %arg5: memref<1x1x1xf32, #tpu.memory_space<vmem>>, %arg6: memref<8x256xf32, #tpu.memory_space<vmem>>) attributes {dimension_semantics = [#tpu.dimension_semantics<parallel>, #tpu.dimension_semantics<arbitrary>], iteration_bounds = array<i64: 1, 1>, scalar_prefetch = 0 : i64, scratch_operands = 1 : i64, tpu.core_type = #tpu.core_type<tc>, window_params = [{transform_indices = @transform_0, window_bounds = array<i64: 16, 256>}, {transform_indices = @transform_1, window_bounds = array<i64: 16, 256>}, {pipeline_mode = #tpu.pipeline_mode<synchronous>, transform_indices = @transform_2, window_bounds = array<i64: 1, 256>}, {transform_indices = @transform_3, window_bounds = array<i64: 1, 1, 1>}]} {
    %c0_i32 = arith.constant 0 : i32
    %0 = arith.cmpi eq, %arg1, %c0_i32 : i32
    %1 = arith.extui %0 : i1 to i32
    %c0_i32_0 = arith.constant 0 : i32
    %2 = arith.cmpi ne, %1, %c0_i32_0 : i32
    scf.if %2 {
      %cst_21 = arith.constant 0.000000e+00 : f32
      %44 = vector.broadcast %cst_21 : f32 to vector<8x256xf32>
      %c0_22 = arith.constant 0 : index
      %c0_23 = arith.constant 0 : index
      %45 = vector.load %arg6[%c0_22, %c0_23] : memref<8x256xf32, #tpu.memory_space<vmem>>, vector<8x256xf32>
      tpu.vector_store %arg6[%c0_22, %c0_23], %44 {strides = array<i32>} : memref<8x256xf32, #tpu.memory_space<vmem>>, vector<8x256xf32>,
    } else {
    }
    %c0 = arith.constant 0 : index
    %c0_1 = arith.constant 0 : index
    %3 = vector.load %arg2[%c0, %c0_1] : memref<16x256xf32, #tpu.memory_space<vmem>>, vector<16x256xf32>
    %c0_2 = arith.constant 0 : index
    %c0_3 = arith.constant 0 : index
    %4 = vector.load %arg3[%c0_2, %c0_3] : memref<16x256xf32, #tpu.memory_space<vmem>>, vector<16x256xf32>
    %cst = arith.constant 2.000000e+00 : f32
    %5 = vector.broadcast %cst : f32 to vector<16x256xf32>
    %6 = arith.mulf %5, %4 : vector<16x256xf32>
    %cst_4 = arith.constant 1.000000e+00 : f32
    %7 = vector.broadcast %cst_4 : f32 to vector<16x256xf32>
    %8 = arith.subf %6, %7 : vector<16x256xf32>
    %9 = arith.mulf %8, %3 : vector<16x256xf32>
    %10 = math.absf %9 : vector<16x256xf32>
    %cst_5 = arith.constant 0.000000e+00 : f32
    %11 = vector.broadcast %cst_5 : f32 to vector<16x256xf32>
    %12 = arith.subf %11, %10 : vector<16x256xf32>
    %13 = math.exp %12 : vector<16x256xf32>
    %cst_6 = arith.constant 0.000000e+00 : f32
    %14 = vector.broadcast %cst_6 : f32 to vector<16x256xf32>
    %15 = arith.minimumf %9, %14 : vector<16x256xf32>
    %cst_7 = arith.constant 1.000000e+00 : f32
    %16 = vector.broadcast %cst_7 : f32 to vector<16x256xf32>
    %17 = arith.addf %16, %13 : vector<16x256xf32>
    %18 = math.log %17 : vector<16x256xf32>
    %19 = arith.subf %15, %18 : vector<16x256xf32>
    %cst_8 = arith.constant 0.000000e+00 : f32
    %20 = vector.broadcast %cst_8 : f32 to vector<16x256xf32>
    %21 = arith.cmpf oge, %9, %20 : vector<16x256xf32>
    %cst_9 = arith.constant 1.000000e+00 : f32
    %22 = vector.broadcast %cst_9 : f32 to vector<16x256xf32>
    %23 = arith.select %21, %22, %13 : vector<16x256xi1>, vector<16x256xf32>
    %cst_10 = arith.constant 1.000000e+00 : f32
    %24 = vector.broadcast %cst_10 : f32 to vector<16x256xf32>
    %25 = arith.addf %24, %13 : vector<16x256xf32>
    %26 = tpu.reciprocal %25 {approx = true} : vector<16x256xf32> -> vector<16x256xf32>
    %27 = arith.mulf %23, %26 : vector<16x256xf32>
    %cst_11 = arith.constant -27.6310215 : f32
    %28 = vector.broadcast %cst_11 : f32 to vector<16x256xf32>
    %29 = arith.maximumf %19, %28 : vector<16x256xf32>
    %cst_12 = arith.constant 1.000000e+00 : f32
    %30 = vector.broadcast %cst_12 : f32 to vector<16x256xf32>
    %31 = arith.subf %30, %27 : vector<16x256xf32>
    %32 = arith.mulf %31, %31 : vector<16x256xf32>
    %cst_13 = arith.constant -1.000000e+00 : f32
    %33 = vector.broadcast %cst_13 : f32 to vector<16x256xf32>
    %34 = arith.mulf %33, %32 : vector<16x256xf32>
    %35 = arith.mulf %34, %29 : vector<16x256xf32>
    %c0_14 = arith.constant 0 : index
    %c0_15 = arith.constant 0 : index
    %36 = vector.load %arg6[%c0_14, %c0_15] : memref<8x256xf32, #tpu.memory_space<vmem>>, vector<8x256xf32>
    %37 = vector.shape_cast %35 : vector<16x256xf32> to vector<2x8x256xf32>
    %cst_16 = arith.constant dense<0.000000e+00> : vector<8x256xf32>
    %38 = vector.multi_reduction <add>, %37, %cst_16 [0] : vector<2x8x256xf32> to vector<8x256xf32>
    %39 = arith.addf %36, %38 : vector<8x256xf32>
    %c0_17 = arith.constant 0 : index
    %c0_18 = arith.constant 0 : index
    %40 = vector.load %arg6[%c0_17, %c0_18] : memref<8x256xf32, #tpu.memory_space<vmem>>, vector<8x256xf32>
    tpu.vector_store %arg6[%c0_17, %c0_18], %39 {strides = array<i32>} : memref<8x256xf32, #tpu.memory_space<vmem>>, vector<8x256xf32>,
    %c0_i32_19 = arith.constant 0 : i32
    %41 = arith.cmpi eq, %arg1, %c0_i32_19 : i32
    %42 = arith.extui %41 : i1 to i32
    %c0_i32_20 = arith.constant 0 : i32
    %43 = arith.cmpi ne, %42, %c0_i32_20 : i32
    scf.if %43 {
      %c0_21 = arith.constant 0 : index
      %c0_22 = arith.constant 0 : index
      %44 = vector.load %arg4[%c0_21, %c0_22] : memref<1x256xf32, #tpu.memory_space<vmem>>, vector<1x256xf32>
      %c0_23 = arith.constant 0 : index
      %c0_24 = arith.constant 0 : index
      %45 = vector.load %arg6[%c0_23, %c0_24] : memref<8x256xf32, #tpu.memory_space<vmem>>, vector<8x256xf32>
      %46 = vector.broadcast %44 : vector<1x256xf32> to vector<8x256xf32>
      %47 = arith.mulf %45, %46 : vector<8x256xf32>
      %48 = vector.shape_cast %47 : vector<8x256xf32> to vector<1x8x256xf32>
      %cst_25 = arith.constant dense<0.000000e+00> : vector<1xf32>
      %49 = vector.multi_reduction <add>, %48, %cst_25 [1, 2] : vector<1x8x256xf32> to vector<1xf32>
      %50 = vector.shape_cast %49 : vector<1xf32> to vector<1x1x1xf32>
      %51 = vector.extract %50[0, 0, 0] : f32 from vector<1x1x1xf32>
      %52 = vector.broadcast %51 : f32 to vector<1x1x1xf32>
      %c0_26 = arith.constant 0 : index
      %c0_27 = arith.constant 0 : index
      %c0_28 = arith.constant 0 : index
      %53 = vector.load %arg5[%c0_26, %c0_27, %c0_28] : memref<1x1x1xf32, #tpu.memory_space<vmem>>, vector<1x1x1xf32>
      tpu.vector_store %arg5[%c0_26, %c0_27, %c0_28], %52 {strides = array<i32>} : memref<1x1x1xf32, #tpu.memory_space<vmem>>, vector<1x1x1xf32>,
    } else {
    }
    return
  }
  func.func @transform_0(%arg0: i32, %arg1: i32) -> (i32, i32) {
    %c1_i32 = arith.constant 1 : i32
    %0 = arith.muli %arg0, %c1_i32 : i32
    %1 = arith.addi %0, %arg1 : i32
    %c0_i32 = arith.constant 0 : i32
    %2 = arith.minsi %1, %c0_i32 : i32
    %c0_i32_0 = arith.constant 0 : i32
    %c0_i32_1 = arith.constant 0 : i32
    return %2, %c0_i32_0 : i32, i32
  }
  func.func @transform_1(%arg0: i32, %arg1: i32) -> (i32, i32) {
    %c1_i32 = arith.constant 1 : i32
    %0 = arith.muli %arg0, %c1_i32 : i32
    %1 = arith.addi %0, %arg1 : i32
    %c0_i32 = arith.constant 0 : i32
    %2 = arith.minsi %1, %c0_i32 : i32
    %c0_i32_0 = arith.constant 0 : i32
    %c0_i32_1 = arith.constant 0 : i32
    return %2, %c0_i32_0 : i32, i32
  }
  func.func @transform_2(%arg0: i32, %arg1: i32) -> (i32, i32) {
    %c0_i32 = arith.constant 0 : i32
    %c0_i32_0 = arith.constant 0 : i32
    %c0_i32_1 = arith.constant 0 : i32
    return %c0_i32, %c0_i32_0 : i32, i32
  }
  func.func @transform_3(%arg0: i32, %arg1: i32) -> (i32, i32, i32) {
    %c0_i32 = arith.constant 0 : i32
    %c0_i32_0 = arith.constant 0 : i32
    %c0_i32_1 = arith.constant 0 : i32
    return %arg0, %c0_i32, %c0_i32_0 : i32, i32, i32
  }
}

</mosaic_0001>

<bundles_post_ra>
// kernel: tpu_custom_call.1
= control target key start
LH: loop header
LB: loop body
LE: loop exit
PB: predicated region body
PF: predicated region fallthrough
CT: control target
= control target key end

     0   :  { %8 = vsyncpa [#allocation4], 0  ;;  %s455_s0 = inlined_call_operand.hbm [shape: f32[16,256], index: 0, kind: input, shape index: {}]   ;;  %s456_s1 = inlined_call_operand.hbm [shape: f32[16,256], index: 1, kind: input, shape index: {}]   ;;  %s457_s2 = inlined_call_operand.hbm [shape: f32[1,256], index: 2, kind: input, shape index: {}]   ;;  %s458_s3 = inlined_call_operand.hbm [shape: f32[1,1,1], index: 3, kind: output, shape index: {}]  }
   0x1   :  { %9 = vsyncpa [#allocation7], 0 }
   0x2   :  { %10 = vsyncpa [#allocation5], 0  ;;  %s364_s12 = smov [#allocation6]   ;;  %s365_s14 = smov [#allocation3]  }
   0x3   :  { %s42_s13 = sshll.u32 %s364_s12, 4  ;;  %s23_s15 = sshll.u32 %s365_s14, 4  ;;  %s43_s13 = int_to_ptr.vmem [resolvable:$true] %s42_s13  ;;  %s390_s15 = int_to_ptr.vmem [resolvable:$true] %s23_s15 }
   0x4   :  { %s270_s18 = scalar_lea.hbm %s456_s1, 512 }
   0x5   :  { %p271_p0 = scmp.ne.s32.totalorder %s456_s1, %s270_s18  ;;  %p274_p1 = scmp.lt.u32.totalorder %s270_s18, %s456_s1 }
   0x7   :  { %p276_p2 = pnand %p274_p1, %p271_p0 }
   0x9   :  { %279 = shalt.err (!%p276_p2)
}
   0xa   :  { %s280_s23 = scalar_lea.vmem %s43_s13, 512  ;;  %p285_p4 = scmp.lt.s32.totalorder %s43_s13, %s43_s13 }
   0xb   :  { %p281_p3 = scmp.ne.s32.totalorder %s43_s13, %s280_s23  ;;  %p286_p5 = scmp.lt.s32.totalorder %s280_s23, %s280_s23 }
   0xd   :  { %p287_p6 = por %p286_p5, %p285_p4 }
   0xf   :  { %p288_p7 = pnand %p287_p6, %p281_p3 }
  0x11   :  { %291 = shalt.err (!%p288_p7)
}
  0x12   :  { %s366_s24 = smov 256   ;;  %s367_s25 = smov 16  }
  0x13   :  { %48 = dma.hbm_to_vmem [thread:$0]  %s456_s1, 512, %s43_s13, [#allocation7], %s366_s24, %s366_s24, %s367_s25  }
  0x14   :  { %s292_s30 = scalar_lea.hbm %s455_s0, 512 }
  0x15   :  { %p293_p8 = scmp.ne.s32.totalorder %s455_s0, %s292_s30  ;;  %p296_p9 = scmp.lt.u32.totalorder %s292_s30, %s455_s0 }
  0x17   :  { %p298_p10 = pnand %p296_p9, %p293_p8 }
  0x19   :  { %301 = shalt.err (!%p298_p10)
}
  0x1a   :  { %s302_s8 = scalar_lea.vmem %s390_s15, 512  ;;  %p307_p12 = scmp.lt.s32.totalorder %s390_s15, %s390_s15 }
  0x1b   :  { %p303_p11 = scmp.ne.s32.totalorder %s390_s15, %s302_s8  ;;  %p308_p13 = scmp.lt.s32.totalorder %s302_s8, %s302_s8 }
  0x1d   :  { %p309_p0 = por %p308_p13, %p307_p12 }
  0x1f   :  { %p310_p1 = pnand %p309_p0, %p303_p11 }
  0x21   :  { %313 = shalt.err (!%p310_p1)
}
  0x22   :  { %29 = dma.hbm_to_vmem [thread:$0]  %s455_s0, 512, %s390_s15, [#allocation4], %s366_s24, %s366_s24, %s367_s25  }
  0x23   :  { %s368_s10 = smov [#allocation8]   ;;  %s314_s14 = scalar_lea.hbm %s457_s2, 32 }
  0x24   :  { %s55_s11 = sshll.u32 %s368_s10, 4  ;;  %p315_p2 = scmp.ne.s32.totalorder %s457_s2, %s314_s14  ;;  %s56_s11 = int_to_ptr.vmem [resolvable:$true] %s55_s11 }
  0x25   :  { %p318_p3 = scmp.lt.u32.totalorder %s314_s14, %s457_s2 }
  0x27   :  { %p320_p4 = pnand %p318_p3, %p315_p2 }
  0x29   :  { %323 = shalt.err (!%p320_p4)
}
  0x2a   :  { %s324_s20 = scalar_lea.vmem %s56_s11, 32  ;;  %p329_p6 = scmp.lt.s32.totalorder %s56_s11, %s56_s11 }
  0x2b   :  { %p325_p5 = scmp.ne.s32.totalorder %s56_s11, %s324_s20  ;;  %p330_p7 = scmp.lt.s32.totalorder %s324_s20, %s324_s20 }
  0x2d   :  { %p331_p8 = por %p330_p7, %p329_p6 }
  0x2f   :  { %p332_p9 = pnand %p331_p8, %p325_p5 }
  0x31   :  { %335 = shalt.err (!%p332_p9)
}
  0x32   :  { %58 = dma.hbm_to_vmem [thread:$0]  %s457_s2, 32, %s56_s11, [#allocation7]  }
  0x33   :  { %358 = dma.done.wait [#allocation4], 512  }
  0x34   :  { %359 = vsyncadd [#allocation4], 4294966784 }
  0x35   :  { %360 = dma.done.wait [#allocation7], 544  }
  0x36   :  { %361 = vsyncadd [#allocation7], 4294966752  ;;  %v86_v0 = vld [vmem:[#allocation6] sm:$0xff]  ;;  %v87_v1 = vld [vmem:[#allocation6 + $0x8] sm:$0xff]  ;;  %v189_v52 = vlaneseq  ;;  %s369_s2 = smov [#allocation9]   ;;  %vm212_vm4 = vcmask 0  }
  0x37   :  { %v88_v2 = vld [vmem:[#allocation6 + $0x10] sm:$0xff]  ;;  %v89_v3 = vld [vmem:[#allocation6 + $0x18] sm:$0xff]  ;;  %v90_v4 = vmul.f32 2.0, %v86_v0  ;;  %v91_v5 = vmul.f32 2.0, %v87_v1  ;;  %v82_v6 = vld [vmem:[#allocation3] sm:$0xff]  ;;  %s220_s21 = sshll.u32 %s369_s2, 4  ;;  %s221_s21 = int_to_ptr.vmem [resolvable:$true] %s220_s21 }
  0x38   :  { %v83_v7 = vld [vmem:[#allocation3 + $0x8] sm:$0xff]  ;;  %v92_v8 = vmul.f32 2.0, %v88_v2  ;;  %v93_v9 = vmul.f32 2.0, %v89_v3  ;;  %v84_v10 = vld [vmem:[#allocation3 + $0x10] sm:$0xff]  ;;  %v85_v11 = vld [vmem:[#allocation3 + $0x18] sm:$0xff]  ;;  %s336_s23 = scalar_lea.vmem %s221_s21, 16  ;;  %p341_p11 = scmp.lt.s32.totalorder %s221_s21, %s221_s21 }
  0x39   :  { %v234_v12 = vadd.f32 -1.0, %v90_v4  ;;  %v235_v13 = vadd.f32 -1.0, %v91_v5  ;;  %v190_v4 = vshrl.u32 %v189_v52, 7  ;;  %p337_p10 = scmp.ne.s32.totalorder %s221_s21, %s336_s23  ;;  %s340_s24 = scalar_lea.vmem %s221_s21, 32 }
  0x3a   :  { %v236_v14 = vadd.f32 -1.0, %v92_v8  ;;  %v237_v15 = vadd.f32 -1.0, %v93_v9  ;;  %p342_p12 = scmp.lt.s32.totalorder %s340_s24, %s336_s23 }
  0x3b   :  { %v98_v16 = vmul.f32 %v234_v12, %v82_v6  ;;  %v99_v17 = vmul.f32 %v235_v13, %v83_v7 }
  0x3c   :  { %v433_v18 = vmul.f32 %v236_v14, %v84_v10  ;;  %v435_v19 = vmul.f32 %v237_v15, %v85_v11  ;;  %p343_p13 = por %p342_p12, %p341_p11 }
  0x3d   :  { %v102_v20 = vand.u32 2147483647, %v98_v16  ;;  %v103_v21 = vand.u32 2147483647, %v99_v17  ;;  %vm138_vm0 = vcmp.ge.f32.partialorder %v98_v16, 0.0  ;;  %vm139_vm1 = vcmp.ge.f32.partialorder %v99_v17, 0.0 }
  0x3e   :  { %v104_v22 = vand.u32 2147483647, %v433_v18  ;;  %v105_v23 = vand.u32 2147483647, %v435_v19  ;;  %v118_v42 = vmin.f32 %v98_v16, 0.0  ;;  %vm140_vm2 = vcmp.ge.f32.partialorder %v433_v18, 0.0  ;;  %p344_p0 = pnand %p343_p13, %p337_p10 }
  0x3f   :  { %v106_v24 = vsub.f32 0.0, %v102_v20  ;;  %v107_v25 = vsub.f32 0.0, %v103_v21  ;;  %v119_v45 = vmin.f32 %v99_v17, 0.0  ;;  %vm141_vm3 = vcmp.ge.f32.partialorder %v435_v19, 0.0  ;;  %v185_v21 = vld [vmem:[#allocation8] sm:$0x3] }
  0x40   :  { %v108_v26 = vsub.f32 0.0, %v104_v22  ;;  %v109_v27 = vsub.f32 0.0, %v105_v23  ;;  %v120_v49 = vmin.f32 %v433_v18, 0.0  ;;  %v121_v54 = vmin.f32 %v435_v19, 0.0 }
  0x41   :  { %v110_v28 = vmul.f32 1.442695, %v106_v24  ;;  %v112_v29 = vmul.f32 1.442695, %v107_v25  ;;  %v191_v17 = vsub.s32 0, %v190_v4  ;;  %v195_v22 = vsub.s32 1, %v190_v4 }
  0x42   :  { %v114_v30 = vmul.f32 1.442695, %v108_v26  ;;  %v116_v31 = vmul.f32 1.442695, %v109_v27 }
  0x43   :  { %246 = vpow2.f32 %v110_v28  ;;  %v192_v28 = vrot.slane %v185_v21, %v191_v17 }
  0x44   :  { %248 = vpow2.f32 %v112_v29 }
  0x45   :  { %250 = vpow2.f32 %v114_v30  ;;  %v196_v30 = vrot.slane %v185_v21, %v195_v22 }
  0x46   :  { %252 = vpow2.f32 %v116_v31 }
  0x4d   :  { %v247_v32 = vpop.eup %246 }
  0x4e   :  { %v249_v33 = vpop.eup %248  ;;  %v122_v34 = vadd.f32 1.0, %v247_v32  ;;  %v142_v47 = vsel %vm138_vm0, 1.0, %v247_v32 }
  0x4f   :  { %v251_v35 = vpop.eup %250  ;;  %v123_v36 = vadd.f32 1.0, %v249_v33  ;;  %v143_v51 = vsel %vm139_vm1, 1.0, %v249_v33 }
  0x50   :  { %v253_v37 = vpop.eup %252  ;;  %v124_v38 = vadd.f32 1.0, %v251_v35  ;;  %254 = vlog2.f32 %v122_v34  ;;  %v144_v56 = vsel %vm140_vm2, 1.0, %v251_v35 }
  0x51   :  { %v125_v39 = vadd.f32 1.0, %v253_v37  ;;  %256 = vlog2.f32 %v123_v36  ;;  %v145_v59 = vsel %vm141_vm3, 1.0, %v253_v37 }
  0x52   :  { %258 = vlog2.f32 %v124_v38 }
  0x53   :  { %260 = vlog2.f32 %v125_v39 }
  0x54   :  { %262 = vrcp.f32 %v122_v34 }
  0x55   :  { %264 = vrcp.f32 %v123_v36 }
  0x56   :  { %266 = vrcp.f32 %v124_v38 }
  0x57   :  { %268 = vrcp.f32 %v125_v39 }
  0x5a   :  { %v255_v40 = vpop.eup %254 }
  0x5b   :  { %v257_v41 = vpop.eup %256  ;;  %v127_v43 = vmul.f32 0.6931472, %v255_v40 }
  0x5c   :  { %v259_v44 = vpop.eup %258  ;;  %v129_v46 = vmul.f32 0.6931472, %v257_v41 }
  0x5d   :  { %v261_v48 = vpop.eup %260  ;;  %v131_v50 = vmul.f32 0.6931472, %v259_v44  ;;  %v134_v58 = vsub.f32 %v118_v42, %v127_v43 }
  0x5e   :  { %v263_v53 = vpop.eup %262  ;;  %v133_v55 = vmul.f32 0.6931472, %v261_v48  ;;  %v135_v62 = vsub.f32 %v119_v45, %v129_v46 }
  0x5f   :  { %v265_v57 = vpop.eup %264  ;;  %v150_v60 = vmul.f32 %v263_v53, %v142_v47  ;;  %v136_v1 = vsub.f32 %v120_v49, %v131_v50  ;;  %v154_v8 = vmax.f32 %v134_v58, -27.631021 }
  0x60   :  { %v267_v61 = vpop.eup %266  ;;  %v151_v63 = vmul.f32 %v265_v57, %v143_v51  ;;  %v137_v5 = vsub.f32 %v121_v54, %v133_v55  ;;  %v155_v11 = vmax.f32 %v135_v62, -27.631021 }
  0x61   :  { %v269_v0 = vpop.eup %268  ;;  %v152_v2 = vmul.f32 %v267_v61, %v144_v56  ;;  %v158_v3 = vsub.f32 1.0, %v150_v60  ;;  %v156_v14 = vmax.f32 %v136_v1, -27.631021 }
  0x62   :  { %v153_v6 = vmul.f32 %v269_v0, %v145_v59  ;;  %v159_v7 = vsub.f32 1.0, %v151_v63  ;;  %v157_v18 = vmax.f32 %v137_v5, -27.631021 }
  0x63   :  { %v160_v9 = vsub.f32 1.0, %v152_v2  ;;  %v162_v10 = vmul.f32 %v158_v3, %v158_v3 }
  0x64   :  { %v161_v12 = vsub.f32 1.0, %v153_v6  ;;  %v163_v13 = vmul.f32 %v159_v7, %v159_v7 }
  0x65   :  { %v164_v15 = vmul.f32 %v160_v9, %v160_v9  ;;  %v166_v16 = vmul.f32 -1.0, %v162_v10 }
  0x66   :  { %v165_v19 = vmul.f32 %v161_v12, %v161_v12  ;;  %v167_v20 = vmul.f32 -1.0, %v163_v13 }
  0x67   :  { %v168_v23 = vmul.f32 -1.0, %v164_v15  ;;  %v170_v24 = vmul.f32 %v166_v16, %v154_v8 }
  0x68   :  { %v169_v25 = vmul.f32 -1.0, %v165_v19  ;;  %v171_v26 = vmul.f32 %v167_v20, %v155_v11 }
  0x69   :  { %v172_v27 = vmul.f32 %v168_v23, %v156_v14 }
  0x6a   :  { %v173_v29 = vmul.f32 %v169_v25, %v157_v18 }
  0x6b   :  { %v176_v31 = vadd.f32 %v172_v27, %v170_v24 }
  0x6c   :  { %v177_v32 = vadd.f32 %v173_v29, %v171_v26 }
  0x6d   :  { %v199_v33 = vmul.f32 %v192_v28, %v176_v31 }
  0x6e   :  { %v200_v34 = vmul.f32 %v196_v30, %v177_v32 }
  0x70   :  { %v201_v35 = vadd.f32 %v200_v34, %v199_v33 }
  0x72   :  { %202 = vadd.xlane.f32.xlu0 %v201_v35 }
  0xff   :  { %v203_v36 = vpop.xlane.xlu0 %202 }
 0x100   :  { %v204_v37 = vrot.slane %v203_v36, 4 }
 0x102   :  { %v205_v38 = vadd.f32 %v204_v37, %v203_v36 }
 0x104   :  { %v206_v39 = vrot.slane %v205_v38, 2 }
 0x106   :  { %v207_v40 = vadd.f32 %v206_v39, %v205_v38 }
 0x108   :  { %v208_v41 = vrot.slane %v207_v40, 1 }
 0x10a   :  { %v209_v42 = vadd.f32 %v208_v41, %v207_v40 }
 0x10c   :  { %238 = vpush %v209_v42 }
 0x13d   :  { %s239_s22 = spop %238 }
 0x13e   :  { %v211_v43 = vstv %s239_s22 }
 0x13f   :  { %213 = vst.msk [vmem:[#allocation9] sm:$0x1] %vm212_vm4, %v211_v43 }
 0x140   :  { %347 = shalt.err (!%p344_p0)
}
 0x141   :  { %s348_s27 = scalar_lea.hbm %s458_s3, 16 }
 0x142   :  { %p349_p1 = scmp.ne.s32.totalorder %s458_s3, %s348_s27  ;;  %p352_p2 = scmp.lt.u32.totalorder %s348_s27, %s458_s3 }
 0x144   :  { %p354_p3 = pnand %p352_p2, %p349_p1 }
 0x146   :  { %357 = shalt.err (!%p354_p3)
}
 0x147   :  { %223 = dma.vmem_to_hbm [thread:$0]  %s221_s21, 16, %s458_s3, [#allocation5]  }
 0x148   :  { %362 = dma.done.wait [#allocation5], 16  }
 0x149   :  { %363 = vsyncadd [#allocation5], 4294967280 }
 0x14a   :  { %227 = vsyncpa [#allocation4], 1 }
 0x14b   :  { %228 = vsyncpa [#allocation7], 1 }
 0x14c   :  { %229 = vsyncpa [#allocation5], 1 }

</bundles_post_ra>
